<compile_context>
chip_gen: v7x
topology: tpu7x:2x2x1
jax: 0.10.0
libtpu: 0.0.40
codegen_flags: <defaults>
</compile_context>

<pallas_src>
import jax
import jax.numpy as jnp
from jax.experimental import pallas as pl
from jax.experimental.pallas import tpu as pltpu

# Small demo shapes consistent with the module (defaults: embed_dim=256,
# queue_size=57600, seq_len=90, vocab 'sci'=31090).
EMBED_DIM = 128          # lane-aligned demo size (production: 256)
QUEUE_SIZE = 64
SEQ_LEN = 90
SEQ_PAD = 128            # queue sequence dim padded to a full 128-lane vreg
BATCH = 8
VOCAB_SIZE = 31090       # args.bert == 'sci'
SEP_TOKEN_ID = 579       # knowledge_token.attention_mask[input_ids == 579] = 0


def _enqueue_kernel(ptr_ref,          # SMEM (1,)   i32
                    text_feat_ref,    # VMEM (B,D)  f32
                    ids_ref,          # VMEM (B,Lp) i32
                    mask_ref,         # VMEM (B,Lp) f32  (kernel-private copy)
                    text_q_in,        # HBM  (Q,D)  f32  (aliased -> out 0)
                    ids_q_in,         # HBM  (Q,Lp) i32  (aliased -> out 1)
                    mask_q_in,        # HBM  (Q,Lp) f32  (aliased -> out 2)
                    text_q_out,       # HBM  (Q,D)  f32
                    ids_q_out,        # HBM  (Q,Lp) i32
                    mask_q_out,       # HBM  (Q,Lp) f32
                    new_ptr_ref,      # SMEM (1,)   i32
                    sems):            # DMA semaphores (3,)
    del text_q_in, ids_q_in, mask_q_in      # same buffers as *_q_out (aliased)

    bs = ids_ref.shape[0]
    queue_size = ids_q_out.shape[0]
    ptr = ptr_ref[0]

    # attention_mask[input_ids == 579] = 0 — written back into the kernel's
    # private VMEM copy of the mask tile (no extra scratch buffer).
    mask_ref[...] = jnp.where(ids_ref[...] == SEP_TOKEN_ID,
                              0.0, mask_ref[...]).astype(mask_ref.dtype)

    # Enqueue the batch: three contiguous row-slab writes, only the
    # [ptr:ptr+bs] windows of the HBM queues are touched.
    cp_text = pltpu.make_async_copy(
        text_feat_ref, text_q_out.at[pl.ds(ptr, bs), :], sems.at[0])
    cp_ids = pltpu.make_async_copy(
        ids_ref, ids_q_out.at[pl.ds(ptr, bs), :], sems.at[1])
    cp_mask = pltpu.make_async_copy(
        mask_ref, mask_q_out.at[pl.ds(ptr, bs), :], sems.at[2])
    cp_text.start()
    cp_ids.start()
    cp_mask.start()

    # queue_ptr = (ptr + batch_size) % queue_size
    # (scalar write issued before the DMA waits to keep sst->sld forwarding)
    new_ptr_ref[0] = (ptr + bs) % queue_size

    cp_text.wait()
    cp_ids.wait()
    cp_mask.wait()


def _knowledge_forward(text_feat, input_ids, attention_mask,
                       text_queue_qd, ids_queue, mask_queue, queue_ptr):
    """In-place enqueue.

    text_queue_qd is stored as [queue_size, embed_dim] (row-major transpose of
    PyTorch's [embed_dim, queue_size]); ids_queue / mask_queue as
    [queue_size, SEQ_PAD] with the last SEQ_PAD-SEQ_LEN columns zero-padded.
    Returns (text_queue_qd, ids_queue, mask_queue, queue_ptr[1]).
    """
    b, d = text_feat.shape
    q, lp = ids_queue.shape
    l = input_ids.shape[1]
    # Mirrors the PyTorch `assert self.queue_size % batch_size == 0`
    # (guarantees the pl.ds(ptr, bs) window never wraps / runs OOB).
    assert q % b == 0, "queue_size must be divisible by batch_size"
    assert lp >= l

    # Pad the (tiny) batch token tiles to the lane-aligned queue row width.
    if lp > l:
        input_ids = jnp.pad(input_ids, ((0, 0), (0, lp - l)))
        attention_mask = jnp.pad(attention_mask, ((0, 0), (0, lp - l)))

    hbm = pl.BlockSpec(memory_space=pl.ANY)
    vmem = pl.BlockSpec(memory_space=pltpu.MemorySpace.VMEM)
    smem = pl.BlockSpec(memory_space=pltpu.MemorySpace.SMEM)

    out_shapes = (
        jax.ShapeDtypeStruct((q, d), text_queue_qd.dtype),   # [queue, embed_dim]
        jax.ShapeDtypeStruct((q, lp), ids_queue.dtype),
        jax.ShapeDtypeStruct((q, lp), mask_queue.dtype),
        jax.ShapeDtypeStruct((1,), jnp.int32),
    )

    return pl.pallas_call(
        _enqueue_kernel,
        out_shape=out_shapes,
        in_specs=[smem, vmem, vmem, vmem, hbm, hbm, hbm],
        out_specs=(hbm, hbm, hbm, smem),
        scratch_shapes=[
            pltpu.SemaphoreType.DMA((3,)),
        ],
        # Queues are updated in place: inputs 4/5/6 alias outputs 0/1/2.
        input_output_aliases={4: 0, 5: 1, 6: 2},
    )(queue_ptr, text_feat, input_ids, attention_mask,
      text_queue_qd, ids_queue, mask_queue)


# Donate the queue buffers so the aliased update is genuinely in place
# (no XLA defensive copy of the O(queue_size) buffers). At real call sites,
# watch for "donation not possible" warnings — a defensive copy would
# silently turn this back into an O(queue_size) operation.
knowledge_forward = jax.jit(_knowledge_forward, donate_argnums=(3, 4, 5))


if __name__ == "__main__":
    key = jax.random.PRNGKey(0)
    k1, k2, k3, k4 = jax.random.split(key, 4)

    # Buffers from __init__ (deterministic synthetic init), stored in the
    # kernel-friendly layouts: text queue row-major [Q, D], token queues
    # zero-padded to SEQ_PAD lanes.
    text_queue_qd = jax.random.normal(k1, (QUEUE_SIZE, EMBED_DIM), dtype=jnp.float32)
    text_queue_qd = text_queue_qd / jnp.linalg.norm(text_queue_qd, axis=1, keepdims=True)
    ids_queue = jax.random.randint(k2, (QUEUE_SIZE, SEQ_LEN), 0, VOCAB_SIZE,
                                   dtype=jnp.int32)
    ids_queue = jnp.pad(ids_queue, ((0, 0), (0, SEQ_PAD - SEQ_LEN)))
    mask_queue = jnp.pad(jnp.ones((QUEUE_SIZE, SEQ_LEN), dtype=jnp.float32),
                         ((0, 0), (0, SEQ_PAD - SEQ_LEN)))
    queue_ptr = jnp.array([40], dtype=jnp.int32)      # non-zero starting ptr

    # Forward inputs: text_feat + pre-tokenized knowledge.
    text_feat = jax.random.normal(k3, (BATCH, EMBED_DIM), dtype=jnp.float32)
    input_ids = jax.random.randint(k4, (BATCH, SEQ_LEN), 0, VOCAB_SIZE,
                                   dtype=jnp.int32)
    input_ids = input_ids.at[:, -3:].set(SEP_TOKEN_ID)   # exercise the 579 mask
    attention_mask = jnp.ones((BATCH, SEQ_LEN), dtype=jnp.float32)

    # Pure-JAX reference of the PyTorch semantics (in the stored layouts),
    # materialized BEFORE the kernel call because the queues are donated.
    ptr = int(queue_ptr[0])
    masked = jnp.where(input_ids == SEP_TOKEN_ID, 0.0, attention_mask)
    ids_pad = jnp.pad(input_ids, ((0, 0), (0, SEQ_PAD - SEQ_LEN)))
    mask_pad = jnp.pad(masked, ((0, 0), (0, SEQ_PAD - SEQ_LEN)))
    ref_tq = text_queue_qd.at[ptr:ptr + BATCH, :].set(text_feat)
    ref_ids = ids_queue.at[ptr:ptr + BATCH, :].set(ids_pad)
    ref_mask = mask_queue.at[ptr:ptr + BATCH, :].set(mask_pad)
    ref_ptr = (ptr + BATCH) % QUEUE_SIZE
    ref_tq, ref_ids, ref_mask = jax.block_until_ready((ref_tq, ref_ids, ref_mask))

    new_tq, new_ids_q, new_mask_q, new_ptr = knowledge_forward(
        text_feat, input_ids, attention_mask,
        text_queue_qd, ids_queue, mask_queue, queue_ptr)
    jax.block_until_ready((new_tq, new_ids_q, new_mask_q, new_ptr))

    assert jnp.allclose(new_tq, ref_tq)
    assert jnp.array_equal(new_ids_q, ref_ids)
    assert jnp.allclose(new_mask_q, ref_mask)
    assert int(new_ptr[0]) == ref_ptr

    print("KERNEL_OK")
</pallas_src>

<mosaic_0001>
module attributes {stable_mosaic.version = 11 : i64} {
  func.func @_enqueue_kernel(%arg0: memref<1xi32, #tpu.memory_space<smem>>, %arg1: memref<8x128xf32, #tpu.memory_space<vmem>>, %arg2: memref<8x128xi32, #tpu.memory_space<vmem>>, %arg3: memref<8x128xf32, #tpu.memory_space<vmem>>, %arg4: memref<64x128xf32, #tpu.memory_space<any>>, %arg5: memref<64x128xi32, #tpu.memory_space<any>>, %arg6: memref<64x128xf32, #tpu.memory_space<any>>, %arg7: memref<64x128xf32, #tpu.memory_space<any>>, %arg8: memref<64x128xi32, #tpu.memory_space<any>>, %arg9: memref<64x128xf32, #tpu.memory_space<any>>, %arg10: memref<1xi32, #tpu.memory_space<smem>>, %arg11: memref<3x!tpu.dma_semaphore, #tpu.memory_space<semaphore_mem>>) attributes {dimension_semantics = [], scalar_prefetch = 0 : i64, scratch_operands = 1 : i64, tpu.core_type = #tpu.core_type<tc>} {
    %c0 = arith.constant 0 : index
    %0 = memref.load %arg0[%c0] : memref<1xi32, #tpu.memory_space<smem>>
    %c0_0 = arith.constant 0 : index
    %c0_1 = arith.constant 0 : index
    %1 = vector.load %arg2[%c0_0, %c0_1] : memref<8x128xi32, #tpu.memory_space<vmem>>, vector<8x128xi32>
    %c579_i32 = arith.constant 579 : i32
    %2 = vector.broadcast %c579_i32 : i32 to vector<8x128xi32>
    %3 = arith.cmpi eq, %1, %2 : vector<8x128xi32>
    %c0_2 = arith.constant 0 : index
    %c0_3 = arith.constant 0 : index
    %4 = vector.load %arg3[%c0_2, %c0_3] : memref<8x128xf32, #tpu.memory_space<vmem>>, vector<8x128xf32>
    %cst = arith.constant 0.000000e+00 : f32
    %5 = vector.broadcast %cst : f32 to vector<8x128xf32>
    %6 = arith.select %3, %5, %4 : vector<8x128xi1>, vector<8x128xf32>
    %c0_4 = arith.constant 0 : index
    %c0_5 = arith.constant 0 : index
    %7 = vector.load %arg3[%c0_4, %c0_5] : memref<8x128xf32, #tpu.memory_space<vmem>>, vector<8x128xf32>
    tpu.vector_store %arg3[%c0_4, %c0_5], %6 {strides = array<i32>} : memref<8x128xf32, #tpu.memory_space<vmem>>, vector<8x128xf32>,
    %c0_i32 = arith.constant 0 : i32
    %c0_i32_6 = arith.constant 0 : i32
    %8 = tpu.memref_slice %arg7[%0, %c0_i32_6] : memref<64x128xf32, #tpu.memory_space<any>> -> memref<8x128xf32, #tpu.memory_space<any>>
    %9 = tpu.memref_slice %arg11[%c0_i32] : memref<3x!tpu.dma_semaphore, #tpu.memory_space<semaphore_mem>> -> memref<1x!tpu.dma_semaphore, #tpu.memory_space<semaphore_mem>>
    %10 = tpu.memref_squeeze %9 : memref<1x!tpu.dma_semaphore, #tpu.memory_space<semaphore_mem>> -> memref<!tpu.dma_semaphore, #tpu.memory_space<semaphore_mem>>
    tpu.enqueue_dma source(%arg1 : memref<8x128xf32, #tpu.memory_space<vmem>>) target(%8 : memref<8x128xf32, #tpu.memory_space<any>>) target_semaphore(%10 : memref<!tpu.dma_semaphore, #tpu.memory_space<semaphore_mem>>)
    %c1_i32 = arith.constant 1 : i32
    %c0_i32_7 = arith.constant 0 : i32
    %11 = tpu.memref_slice %arg8[%0, %c0_i32_7] : memref<64x128xi32, #tpu.memory_space<any>> -> memref<8x128xi32, #tpu.memory_space<any>>
    %12 = tpu.memref_slice %arg11[%c1_i32] : memref<3x!tpu.dma_semaphore, #tpu.memory_space<semaphore_mem>> -> memref<1x!tpu.dma_semaphore, #tpu.memory_space<semaphore_mem>>
    %13 = tpu.memref_squeeze %12 : memref<1x!tpu.dma_semaphore, #tpu.memory_space<semaphore_mem>> -> memref<!tpu.dma_semaphore, #tpu.memory_space<semaphore_mem>>
    tpu.enqueue_dma source(%arg2 : memref<8x128xi32, #tpu.memory_space<vmem>>) target(%11 : memref<8x128xi32, #tpu.memory_space<any>>) target_semaphore(%13 : memref<!tpu.dma_semaphore, #tpu.memory_space<semaphore_mem>>)
    %c2_i32 = arith.constant 2 : i32
    %c0_i32_8 = arith.constant 0 : i32
    %14 = tpu.memref_slice %arg9[%0, %c0_i32_8] : memref<64x128xf32, #tpu.memory_space<any>> -> memref<8x128xf32, #tpu.memory_space<any>>
    %15 = tpu.memref_slice %arg11[%c2_i32] : memref<3x!tpu.dma_semaphore, #tpu.memory_space<semaphore_mem>> -> memref<1x!tpu.dma_semaphore, #tpu.memory_space<semaphore_mem>>
    %16 = tpu.memref_squeeze %15 : memref<1x!tpu.dma_semaphore, #tpu.memory_space<semaphore_mem>> -> memref<!tpu.dma_semaphore, #tpu.memory_space<semaphore_mem>>
    tpu.enqueue_dma source(%arg3 : memref<8x128xf32, #tpu.memory_space<vmem>>) target(%14 : memref<8x128xf32, #tpu.memory_space<any>>) target_semaphore(%16 : memref<!tpu.dma_semaphore, #tpu.memory_space<semaphore_mem>>)
    %c8_i32 = arith.constant 8 : i32
    %17 = arith.addi %0, %c8_i32 : i32
    %c64_i32 = arith.constant 64 : i32
    %c0_i32_9 = arith.constant 0 : i32
    %18 = arith.cmpi eq, %c64_i32, %c0_i32_9 : i32
    %c1_i32_10 = arith.constant 1 : i32
    %19 = arith.select %18, %c1_i32_10, %c64_i32 : i32
    %20 = arith.remsi %17, %19 : i32
    %c0_i32_11 = arith.constant 0 : i32
    %21 = arith.cmpi ne, %20, %c0_i32_11 : i32
    %c0_i32_12 = arith.constant 0 : i32
    %22 = arith.cmpi slt, %20, %c0_i32_12 : i32
    %c0_i32_13 = arith.constant 0 : i32
    %23 = arith.cmpi slt, %19, %c0_i32_13 : i32
    %24 = arith.xori %22, %23 : i1
    %25 = arith.andi %24, %21 : i1
    %26 = arith.addi %20, %19 : i32
    %27 = arith.select %25, %26, %20 : i32
    %c0_14 = arith.constant 0 : index
    %28 = memref.load %arg10[%c0_14] : memref<1xi32, #tpu.memory_space<smem>>
    memref.store %27, %arg10[%c0_14] : memref<1xi32, #tpu.memory_space<smem>>
    %c0_i32_15 = arith.constant 0 : i32
    %c0_i32_16 = arith.constant 0 : i32
    %29 = tpu.memref_slice %arg7[%0, %c0_i32_16] : memref<64x128xf32, #tpu.memory_space<any>> -> memref<8x128xf32, #tpu.memory_space<any>>
    %30 = tpu.memref_slice %arg11[%c0_i32_15] : memref<3x!tpu.dma_semaphore, #tpu.memory_space<semaphore_mem>> -> memref<1x!tpu.dma_semaphore, #tpu.memory_space<semaphore_mem>>
    %31 = tpu.memref_squeeze %30 : memref<1x!tpu.dma_semaphore, #tpu.memory_space<semaphore_mem>> -> memref<!tpu.dma_semaphore, #tpu.memory_space<semaphore_mem>>
    tpu.wait_dma2 semaphore(%31 : memref<!tpu.dma_semaphore, #tpu.memory_space<semaphore_mem>>) src(%arg1 : memref<8x128xf32, #tpu.memory_space<vmem>>) dst(%29 : memref<8x128xf32, #tpu.memory_space<any>>)
    %c1_i32_17 = arith.constant 1 : i32
    %c0_i32_18 = arith.constant 0 : i32
    %32 = tpu.memref_slice %arg8[%0, %c0_i32_18] : memref<64x128xi32, #tpu.memory_space<any>> -> memref<8x128xi32, #tpu.memory_space<any>>
    %33 = tpu.memref_slice %arg11[%c1_i32_17] : memref<3x!tpu.dma_semaphore, #tpu.memory_space<semaphore_mem>> -> memref<1x!tpu.dma_semaphore, #tpu.memory_space<semaphore_mem>>
    %34 = tpu.memref_squeeze %33 : memref<1x!tpu.dma_semaphore, #tpu.memory_space<semaphore_mem>> -> memref<!tpu.dma_semaphore, #tpu.memory_space<semaphore_mem>>
    tpu.wait_dma2 semaphore(%34 : memref<!tpu.dma_semaphore, #tpu.memory_space<semaphore_mem>>) src(%arg2 : memref<8x128xi32, #tpu.memory_space<vmem>>) dst(%32 : memref<8x128xi32, #tpu.memory_space<any>>)
    %c2_i32_19 = arith.constant 2 : i32
    %c0_i32_20 = arith.constant 0 : i32
    %35 = tpu.memref_slice %arg9[%0, %c0_i32_20] : memref<64x128xf32, #tpu.memory_space<any>> -> memref<8x128xf32, #tpu.memory_space<any>>
    %36 = tpu.memref_slice %arg11[%c2_i32_19] : memref<3x!tpu.dma_semaphore, #tpu.memory_space<semaphore_mem>> -> memref<1x!tpu.dma_semaphore, #tpu.memory_space<semaphore_mem>>
    %37 = tpu.memref_squeeze %36 : memref<1x!tpu.dma_semaphore, #tpu.memory_space<semaphore_mem>> -> memref<!tpu.dma_semaphore, #tpu.memory_space<semaphore_mem>>
    tpu.wait_dma2 semaphore(%37 : memref<!tpu.dma_semaphore, #tpu.memory_space<semaphore_mem>>) src(%arg3 : memref<8x128xf32, #tpu.memory_space<vmem>>) dst(%35 : memref<8x128xf32, #tpu.memory_space<any>>)
    return
  }
}

</mosaic_0001>

<bundles_post_ra>
// kernel: _knowledge_forward.1
= control target key start
LH: loop header
LB: loop body
LE: loop exit
PB: predicated region body
PF: predicated region fallthrough
CT: control target
= control target key end

     0   :  { %s366_s0 = inlined_call_operand.<no memory space> [shape: s32[1], index: 0, kind: input, shape index: {}]   ;;  %s367_s1 = inlined_call_operand.vmem [shape: f32[8,128], index: 1, kind: input, shape index: {}]   ;;  %s368_s2 = inlined_call_operand.vmem [shape: s32[8,128], index: 2, kind: input, shape index: {}]   ;;  %s369_s3 = inlined_call_operand.vmem [shape: f32[8,128], index: 3, kind: input, shape index: {}]   ;;  %s370_s4 = inlined_call_operand.hbm [shape: f32[64,128], index: 4, kind: input, shape index: {}, may-alias: {4,7}]   ;;  %s371_s5 = inlined_call_operand.hbm [shape: s32[64,128], index: 5, kind: input, shape index: {}, may-alias: {5,8}]   ;;  %s372_s6 = inlined_call_operand.hbm [shape: f32[64,128], index: 6, kind: input, shape index: {}, may-alias: {6,9}]   ;;  %s373_s7 = inlined_call_operand.hbm [shape: f32[64,128], index: 7, kind: output, shape index: {0}, may-alias: {4,7}]   ;;  %s374_s8 = inlined_call_operand.hbm [shape: s32[64,128], index: 8, kind: output, shape index: {1}, may-alias: {5,8}]   ;;  %s375_s9 = inlined_call_operand.hbm [shape: f32[64,128], index: 9, kind: output, shape index: {2}, may-alias: {6,9}]   ;;  %s376_s10 = inlined_call_operand.hbm [shape: s32[1], index: 10, kind: output, shape index: {3}]  }
   0x1   :  { %s293_s14 = sshll.u32 %s366_s0, 4  ;;  %s41_s6 = sshll.u32 %s367_s1, 4  ;;  %s42_s6 = int_to_ptr.vmem [resolvable:$true] %s41_s6 }
   0x2   :  { %17 = vsyncpa [#allocation5], 0  ;;  %v27_v0 = vld [vmem:[%s368_s2] sm:$0xff]  ;;  %s33_s22 = scalar_lea.hbm %s373_s7, %s293_s14  ;;  %s144_s23 = scalar_lea.vmem %s42_s6, 128 }
   0x3   :  { %v29_v1 = vld [vmem:[%s369_s3] sm:$0xff]  ;;  %vm28_vm0 = vcmp.eq.s32.totalorder %v27_v0, 579  ;;  %p145_p0 = scmp.ne.s32.totalorder %s42_s6, %s144_s23  ;;  %p149_p1 = scmp.lt.s32.totalorder %s42_s6, %s42_s6 }
   0x4   :  { %p150_p2 = scmp.lt.s32.totalorder %s144_s23, %s144_s23 }
   0x6   :  { %p151_p3 = por %p150_p2, %p149_p1 }
   0x8   :  { %p152_p4 = pnand %p151_p3, %p145_p0 }
   0xa   :  { %155 = shalt.err (!%p152_p4)  }
   0xb   :  { %s156_s1 = scalar_lea.hbm %s33_s22, 128  ;;  %s158_s26 = scalar_lea.hbm %s373_s7, 1024 }
   0xc   :  { %p157_p5 = scmp.ne.s32.totalorder %s33_s22, %s156_s1  ;;  %p159_p6 = scmp.lt.u32.totalorder %s33_s22, %s373_s7 }
   0xd   :  { %p160_p7 = scmp.lt.u32.totalorder %s158_s26, %s156_s1  ;;  %p162_p9 = scmp.lt.u32.totalorder %s156_s1, %s33_s22 }
   0xf   :  { %p161_p8 = por %p160_p7, %p159_p6 }
  0x11   :  { %p163_p10 = por %p162_p9, %p161_p8 }
  0x13   :  { %p164_p11 = pnand %p163_p10, %p157_p5 }
  0x15   :  { %167 = shalt.err (!%p164_p11)  }
  0x16   :  { %44 = dma.vmem_to_hbm [thread:$0]  %s42_s6, 128, %s33_s22, [#allocation2]  ;;  %v30_v2 = vsel %vm28_vm0, 0.0, %v29_v1 }
  0x17   :  { %31 = vst [vmem:[%s369_s3] sm:$0xff] %v30_v2  ;;  %s46_s13 = scalar_lea.hbm %s374_s8, %s293_s14  ;;  %s55_s5 = sshll.u32 %s368_s2, 4  ;;  %s56_s5 = int_to_ptr.vmem [resolvable:$true] %s55_s5 }
  0x18   :  { %s329_s6 = scalar_lea.hbm %s375_s9, %s293_s14  ;;  %s168_s17 = scalar_lea.vmem %s56_s5, 128 }
  0x19   :  { %p169_p12 = scmp.ne.s32.totalorder %s56_s5, %s168_s17  ;;  %p173_p13 = scmp.lt.s32.totalorder %s56_s5, %s56_s5 }
  0x1a   :  { %p174_p0 = scmp.lt.s32.totalorder %s168_s17, %s168_s17 }
  0x1c   :  { %p175_p1 = por %p174_p0, %p173_p13 }
  0x1e   :  { %p176_p2 = pnand %p175_p1, %p169_p12 }
  0x20   :  { %179 = shalt.err (!%p176_p2)  }
  0x21   :  { %s180_s18 = scalar_lea.hbm %s46_s13, 128  ;;  %s182_s21 = scalar_lea.hbm %s374_s8, 1024 }
  0x22   :  { %p181_p3 = scmp.ne.s32.totalorder %s46_s13, %s180_s18  ;;  %p183_p4 = scmp.lt.u32.totalorder %s46_s13, %s374_s8 }
  0x23   :  { %p184_p5 = scmp.lt.u32.totalorder %s182_s21, %s180_s18  ;;  %p186_p7 = scmp.lt.u32.totalorder %s180_s18, %s46_s13 }
  0x25   :  { %p185_p6 = por %p184_p5, %p183_p4 }
  0x27   :  { %p187_p8 = por %p186_p7, %p185_p6 }
  0x29   :  { %p188_p9 = pnand %p187_p8, %p181_p3 }
  0x2b   :  { %191 = shalt.err (!%p188_p9)  }
  0x2c   :  { %58 = dma.vmem_to_hbm [thread:$0]  %s56_s5, 128, %s46_s13, [#allocation2 + $0x1] }
  0x2d   :  { %s69_s1 = sshll.u32 %s369_s3, 4  ;;  %s73_s26 = sadd.s32 8, %s366_s0  ;;  %s70_s1 = int_to_ptr.vmem [resolvable:$true] %s69_s1 }
  0x2e   :  { %s192_s27 = scalar_lea.vmem %s70_s1, 128  ;;  %p197_p11 = scmp.lt.s32.totalorder %s70_s1, %s70_s1 }
  0x2f   :  { %p193_p10 = scmp.ne.s32.totalorder %s70_s1, %s192_s27  ;;  %p198_p12 = scmp.lt.s32.totalorder %s192_s27, %s192_s27 }
  0x31   :  { %p199_p13 = por %p198_p12, %p197_p11 }
  0x33   :  { %p200_p0 = pnand %p199_p13, %p193_p10 }
  0x35   :  { %203 = shalt.err (!%p200_p0)  }
  0x36   :  { %s204_s8 = scalar_lea.hbm %s329_s6, 128  ;;  %s206_s29 = scalar_lea.hbm %s375_s9, 1024 }
  0x37   :  { %p205_p1 = scmp.ne.s32.totalorder %s329_s6, %s204_s8  ;;  %p207_p2 = scmp.lt.u32.totalorder %s329_s6, %s375_s9 }
  0x38   :  { %p208_p3 = scmp.lt.u32.totalorder %s206_s29, %s204_s8  ;;  %p210_p5 = scmp.lt.u32.totalorder %s204_s8, %s329_s6 }
  0x3a   :  { %p209_p4 = por %p208_p3, %p207_p2 }
  0x3c   :  { %p211_p6 = por %p210_p5, %p209_p4 }
  0x3e   :  { %p212_p7 = pnand %p211_p6, %p205_p1 }
  0x40   :  { %215 = shalt.err (!%p212_p7)  }
  0x41   :  { %72 = dma.vmem_to_hbm [thread:$0]  %s70_s1, 128, %s329_s6, [#allocation2 + $0x2] }
  0x42   :  { %p74_p8 = scmp.lt.s32.totalorder %s73_s26, 0  ;;  %s75_s11 = ssub.s32 0, %s73_s26 }
  0x43   :  { %s137_s12 = smin.u32 %s75_s11, %s73_s26 }
  0x44   :  { %s77_s13 = sand.u32 63, %s137_s12  }
  0x45   :  { %s78_s7 = ssub.s32 0, %s77_s13 }
  0x46   :  { %s378_s7 = smov (!%p74_p8, %s78_s7), %s77_s13 }
  0x47   :  { %p139_p9 = scmp.lt.s32.totalorder %s378_s7, 0  ;;  %s84_s4 = sadd.s32 64, %s378_s7 }
  0x49   :  { %s380_s4 = smov (!%p139_p9, %s84_s4), %s378_s7 }
  0x4a   :  { %87 = sst [smem:[#allocation4]] %s380_s4 }
  0x4b   :  { %226 = dma.done.wait [#allocation2], 128 }
  0x4c   :  { %227 = vsyncadd [#allocation2], 4294967168 }
  0x4d   :  { %228 = dma.done.wait [#allocation2 + $0x1], 128 }
  0x4e   :  { %229 = vsyncadd [#allocation2 + $0x1], 4294967168 }
  0x4f   :  { %230 = dma.done.wait [#allocation2 + $0x2], 128 }
  0x50   :  { %231 = vsyncadd [#allocation2 + $0x2], 4294967168  ;;  %s216_s15 = scalar_lea.hbm %s376_s10, 16 }
  0x51   :  { %p217_p10 = scmp.ne.s32.totalorder %s376_s10, %s216_s15  ;;  %p220_p11 = scmp.lt.u32.totalorder %s216_s15, %s376_s10 }
  0x53   :  { %p222_p12 = pnand %p220_p11, %p217_p10 }
  0x55   :  { %225 = shalt.err (!%p222_p12)
}
  0x56   :  { %s234_s19 = smov [#allocation4]  }
  0x57   :  { %102 = dma.smem_to_hbm %s234_s19, 16, %s376_s10, [#allocation5]  }
  0x58   :  { %232 = dma.done.wait [#allocation5], 16  }
  0x59   :  { %233 = vsyncadd [#allocation5], 4294967280 }
  0x5a   :  { %106 = sfence }
  0x5b   :  { %107 = vsyncpa [#allocation5], 1 }
  0x5c   :  { %108 = vsyncmov [#allocation2] }
  0x5f   :  { %s109_s2 = vpop.sfrf %108 }
  0x60   :  { %p140_p13 = scmp.ne.s32.totalorder %s109_s2, 0 }
  0x62   :  { %113 = shalt.err (%p140_p13)  }
  0x63   :  { %115 = vsyncmov [#allocation2 + $0x1] }
  0x66   :  { %s116_s22 = vpop.sfrf %115 }
  0x67   :  { %p141_p0 = scmp.ne.s32.totalorder %s116_s22, 0 }
  0x69   :  { %120 = shalt.err (%p141_p0)  }
  0x6a   :  { %122 = vsyncmov [#allocation2 + $0x2] }
  0x6d   :  { %s123_s14 = vpop.sfrf %122 }
  0x6e   :  { %p142_p1 = scmp.ne.s32.totalorder %s123_s14, 0 }
  0x70   :  { %127 = shalt.err (%p142_p1)  }

</bundles_post_ra>
